<compile_context>
chip_gen: v7x
topology: tpu7x:2x2x1
jax: 0.10.0
libtpu: 0.0.40
codegen_flags: <defaults>
</compile_context>

<pallas_src>
import functools

import jax
import jax.numpy as jnp
from jax.experimental import pallas as pl
from jax.experimental.pallas import tpu as pltpu


def policy_kernel(x_ref, w1_ref, b1_ref, w2_ref, b2_ref, w3_ref, b3_ref, o_ref,
                  *, action_dim):
    # x: (tb, D); w1: (D, H); w2: (H, H); w3: (H, A_pad) with zero-padded columns.
    x = x_ref[...]
    h1 = jnp.dot(x, w1_ref[...], preferred_element_type=jnp.float32) + b1_ref[...]
    h1 = jnp.maximum(h1, 0.0)
    h2 = jnp.dot(h1, w2_ref[...], preferred_element_type=jnp.float32) + b2_ref[...]
    h2 = jnp.maximum(h2, 0.0)
    logits = jnp.dot(h2, w3_ref[...], preferred_element_type=jnp.float32) + b3_ref[...]

    # Softmax over the valid action lanes only (padded lanes -> -inf-like -> prob 0).
    lane = jax.lax.broadcasted_iota(jnp.int32, logits.shape, dimension=1)
    valid = lane < action_dim
    logits = jnp.where(valid, logits, jnp.full_like(logits, -1e30))
    m = jnp.max(logits, axis=-1, keepdims=True)
    e = jnp.exp(logits - m)
    s = jnp.sum(e, axis=-1, keepdims=True)
    o_ref[...] = e / s


@functools.partial(jax.jit, static_argnames=("action_dim", "tb"))
def policy_forward(state, w1, b1, w2, b2, w3p, b3p, *, action_dim, tb=None):
    """Pallas implementation of PolicyNetwork.forward(state)."""
    B, D = state.shape
    H = w1.shape[1]
    A_pad = w3p.shape[1]

    if tb is None:
        # Small batch: one invocation, no grid-loop overhead. Large batch: 128-row MXU tiles.
        tb = B if B <= 128 else 128

    # Pad batch to a multiple of the tile (padded rows produce garbage probs, sliced off).
    b_pad = pl.cdiv(B, tb) * tb
    if b_pad != B:
        state = jnp.pad(state, ((0, b_pad - B), (0, 0)))

    grid = (b_pad // tb,)
    kernel = functools.partial(policy_kernel, action_dim=action_dim)

    out = pl.pallas_call(
        kernel,
        out_shape=jax.ShapeDtypeStruct((b_pad, A_pad), jnp.float32),
        grid_spec=pl.GridSpec(
            grid=grid,
            in_specs=[
                pl.BlockSpec((tb, D), lambda i: (i, 0)),     # state: tiled over batch
                pl.BlockSpec((D, H), lambda i: (0, 0)),      # w1 (resident)
                pl.BlockSpec((1, H), lambda i: (0, 0)),      # b1
                pl.BlockSpec((H, H), lambda i: (0, 0)),      # w2
                pl.BlockSpec((1, H), lambda i: (0, 0)),      # b2
                pl.BlockSpec((H, A_pad), lambda i: (0, 0)),  # w3 (lane-padded to 128)
                pl.BlockSpec((1, A_pad), lambda i: (0, 0)),  # b3 (lane-padded to 128)
            ],
            out_specs=pl.BlockSpec((tb, A_pad), lambda i: (i, 0)),
        ),
        compiler_params=pltpu.CompilerParams(
            dimension_semantics=("parallel",)),
    )(state, w1, b1, w2, b2, w3p, b3p)

    return out[:B, :action_dim]


def init_policy_params(key, state_dim, action_dim, hidden=256):
    """Matches torch.nn.Linear default init U(-1/sqrt(fan_in), 1/sqrt(fan_in)).

    fc3 weight/bias are zero-padded along the output dim to a lane-dense 128 columns.
    """
    keys = jax.random.split(key, 6)

    def linear(kw, kb, fan_in, fan_out):
        bound = 1.0 / (fan_in ** 0.5)
        w = jax.random.uniform(kw, (fan_in, fan_out), jnp.float32, -bound, bound)
        b = jax.random.uniform(kb, (1, fan_out), jnp.float32, -bound, bound)
        return w, b

    w1, b1 = linear(keys[0], keys[1], state_dim, hidden)
    w2, b2 = linear(keys[2], keys[3], hidden, hidden)
    w3, b3 = linear(keys[4], keys[5], hidden, action_dim)

    a_pad = max(128, pl.cdiv(action_dim, 128) * 128)
    w3p = jnp.zeros((hidden, a_pad), jnp.float32).at[:, :action_dim].set(w3)
    b3p = jnp.zeros((1, a_pad), jnp.float32).at[:, :action_dim].set(b3)
    return (w1, b1, w2, b2, w3p, b3p)


def policy_ref(state, params, action_dim):
    w1, b1, w2, b2, w3p, b3p = params
    x = jnp.maximum(state @ w1 + b1, 0.0)
    x = jnp.maximum(x @ w2 + b2, 0.0)
    logits = x @ w3p[:, :action_dim] + b3p[:, :action_dim]
    return jax.nn.softmax(logits, axis=-1)


# TODO(synk): sample_action (torch.multinomial categorical sampling) is host-side RNG and
# not part of the forward pass; not implemented in the kernel.


if __name__ == "__main__":
    key = jax.random.PRNGKey(0)
    k_state, k_params = jax.random.split(key, 2)

    batch = 8
    state_dim = 16
    action_dim = 4

    state = jax.random.normal(k_state, (batch, state_dim), dtype=jnp.float32)
    params = init_policy_params(k_params, state_dim, action_dim)

    out = policy_forward(state, *params, action_dim=action_dim)
    out = jax.block_until_ready(out)

    ref = policy_ref(state, params, action_dim)
    assert out.shape == (batch, action_dim)
    assert jnp.allclose(out, ref, atol=1e-4, rtol=1e-4), "Pallas output mismatch vs reference"
    # probabilities should sum to 1 per row
    assert jnp.allclose(jnp.sum(out, axis=-1), 1.0, atol=1e-5), "softmax rows do not sum to 1"

    print("KERNEL_OK")
</pallas_src>

<mosaic_0001>
module attributes {stable_mosaic.version = 11 : i64} {
  func.func @policy_kernel(%arg0: i32, %arg1: memref<8x16xf32, #tpu.memory_space<vmem>>, %arg2: memref<16x256xf32, #tpu.memory_space<vmem>>, %arg3: memref<1x256xf32, #tpu.memory_space<vmem>>, %arg4: memref<256x256xf32, #tpu.memory_space<vmem>>, %arg5: memref<1x256xf32, #tpu.memory_space<vmem>>, %arg6: memref<256x128xf32, #tpu.memory_space<vmem>>, %arg7: memref<1x128xf32, #tpu.memory_space<vmem>>, %arg8: memref<8x128xf32, #tpu.memory_space<vmem>>) attributes {dimension_semantics = [#tpu.dimension_semantics<parallel>], iteration_bounds = array<i64: 1>, scalar_prefetch = 0 : i64, scratch_operands = 0 : i64, tpu.core_type = #tpu.core_type<tc>, window_params = [{transform_indices = @transform_0, window_bounds = array<i64: 8, 16>}, {pipeline_mode = #tpu.pipeline_mode<synchronous>, transform_indices = @transform_1, window_bounds = array<i64: 16, 256>}, {pipeline_mode = #tpu.pipeline_mode<synchronous>, transform_indices = @transform_2, window_bounds = array<i64: 1, 256>}, {pipeline_mode = #tpu.pipeline_mode<synchronous>, transform_indices = @transform_3, window_bounds = array<i64: 256, 256>}, {pipeline_mode = #tpu.pipeline_mode<synchronous>, transform_indices = @transform_4, window_bounds = array<i64: 1, 256>}, {pipeline_mode = #tpu.pipeline_mode<synchronous>, transform_indices = @transform_5, window_bounds = array<i64: 256, 128>}, {pipeline_mode = #tpu.pipeline_mode<synchronous>, transform_indices = @transform_6, window_bounds = array<i64: 1, 128>}, {transform_indices = @transform_7, window_bounds = array<i64: 8, 128>}]} {
    %c0 = arith.constant 0 : index
    %c0_0 = arith.constant 0 : index
    %0 = vector.load %arg1[%c0, %c0_0] : memref<8x16xf32, #tpu.memory_space<vmem>>, vector<8x16xf32>
    %c0_1 = arith.constant 0 : index
    %c0_2 = arith.constant 0 : index
    %1 = vector.load %arg2[%c0_1, %c0_2] : memref<16x256xf32, #tpu.memory_space<vmem>>, vector<16x256xf32>
    %cst = arith.constant dense<0.000000e+00> : vector<8x256xf32>
    %2 = tpu.matmul %0, %1, %cst {dimension_numbers = #tpu.dot_dimension_numbers<[1], [0], [0], [1], [0, 0, 1, 1], [], []>} : vector<8x16xf32>, vector<16x256xf32>, vector<8x256xf32> -> vector<8x256xf32>
    %c0_3 = arith.constant 0 : index
    %c0_4 = arith.constant 0 : index
    %3 = vector.load %arg3[%c0_3, %c0_4] : memref<1x256xf32, #tpu.memory_space<vmem>>, vector<1x256xf32>
    %4 = vector.broadcast %3 : vector<1x256xf32> to vector<8x256xf32>
    %5 = arith.addf %2, %4 : vector<8x256xf32>
    %cst_5 = arith.constant 0.000000e+00 : f32
    %6 = vector.broadcast %cst_5 : f32 to vector<8x256xf32>
    %7 = arith.maximumf %5, %6 : vector<8x256xf32>
    %c0_6 = arith.constant 0 : index
    %c0_7 = arith.constant 0 : index
    %8 = vector.load %arg4[%c0_6, %c0_7] : memref<256x256xf32, #tpu.memory_space<vmem>>, vector<256x256xf32>
    %cst_8 = arith.constant dense<0.000000e+00> : vector<8x256xf32>
    %9 = tpu.matmul %7, %8, %cst_8 {dimension_numbers = #tpu.dot_dimension_numbers<[1], [0], [0], [1], [0, 0, 1, 1], [], []>} : vector<8x256xf32>, vector<256x256xf32>, vector<8x256xf32> -> vector<8x256xf32>
    %c0_9 = arith.constant 0 : index
    %c0_10 = arith.constant 0 : index
    %10 = vector.load %arg5[%c0_9, %c0_10] : memref<1x256xf32, #tpu.memory_space<vmem>>, vector<1x256xf32>
    %11 = vector.broadcast %10 : vector<1x256xf32> to vector<8x256xf32>
    %12 = arith.addf %9, %11 : vector<8x256xf32>
    %cst_11 = arith.constant 0.000000e+00 : f32
    %13 = vector.broadcast %cst_11 : f32 to vector<8x256xf32>
    %14 = arith.maximumf %12, %13 : vector<8x256xf32>
    %c0_12 = arith.constant 0 : index
    %c0_13 = arith.constant 0 : index
    %15 = vector.load %arg6[%c0_12, %c0_13] : memref<256x128xf32, #tpu.memory_space<vmem>>, vector<256x128xf32>
    %cst_14 = arith.constant dense<0.000000e+00> : vector<8x128xf32>
    %16 = tpu.matmul %14, %15, %cst_14 {dimension_numbers = #tpu.dot_dimension_numbers<[1], [0], [0], [1], [0, 0, 1, 1], [], []>} : vector<8x256xf32>, vector<256x128xf32>, vector<8x128xf32> -> vector<8x128xf32>
    %c0_15 = arith.constant 0 : index
    %c0_16 = arith.constant 0 : index
    %17 = vector.load %arg7[%c0_15, %c0_16] : memref<1x128xf32, #tpu.memory_space<vmem>>, vector<1x128xf32>
    %18 = vector.broadcast %17 : vector<1x128xf32> to vector<8x128xf32>
    %19 = arith.addf %16, %18 : vector<8x128xf32>
    %20 = tpu.iota {dimensions = array<i32: 1>} : vector<8x128xi32>
    %c4_i32 = arith.constant 4 : i32
    %21 = vector.broadcast %c4_i32 : i32 to vector<8x128xi32>
    %22 = arith.cmpi slt, %20, %21 : vector<8x128xi32>
    %cst_17 = arith.constant -1.000000e+30 : f32
    %23 = vector.broadcast %cst_17 : f32 to vector<8x128xf32>
    %24 = arith.select %22, %19, %23 : vector<8x128xi1>, vector<8x128xf32>
    %cst_18 = arith.constant dense<0xFF800000> : vector<8xf32>
    %25 = vector.multi_reduction <maximumf>, %24, %cst_18 [1] : vector<8x128xf32> to vector<8xf32>
    %26 = vector.shape_cast %25 : vector<8xf32> to vector<8x1xf32>
    %27 = vector.broadcast %26 : vector<8x1xf32> to vector<8x128xf32>
    %28 = arith.subf %24, %27 : vector<8x128xf32>
    %29 = math.exp %28 : vector<8x128xf32>
    %cst_19 = arith.constant dense<0.000000e+00> : vector<8xf32>
    %30 = vector.multi_reduction <add>, %29, %cst_19 [1] : vector<8x128xf32> to vector<8xf32>
    %31 = vector.shape_cast %30 : vector<8xf32> to vector<8x1xf32>
    %32 = vector.broadcast %31 : vector<8x1xf32> to vector<8x128xf32>
    %33 = arith.divf %29, %32 : vector<8x128xf32>
    %c0_20 = arith.constant 0 : index
    %c0_21 = arith.constant 0 : index
    %34 = vector.load %arg8[%c0_20, %c0_21] : memref<8x128xf32, #tpu.memory_space<vmem>>, vector<8x128xf32>
    tpu.vector_store %arg8[%c0_20, %c0_21], %33 {strides = array<i32>} : memref<8x128xf32, #tpu.memory_space<vmem>>, vector<8x128xf32>,
    return
  }
  func.func @transform_0(%arg0: i32) -> (i32, i32) {
    %c0_i32 = arith.constant 0 : i32
    %c0_i32_0 = arith.constant 0 : i32
    return %arg0, %c0_i32 : i32, i32
  }
  func.func @transform_1(%arg0: i32) -> (i32, i32) {
    %c0_i32 = arith.constant 0 : i32
    %c0_i32_0 = arith.constant 0 : i32
    %c0_i32_1 = arith.constant 0 : i32
    return %c0_i32, %c0_i32_0 : i32, i32
  }
  func.func @transform_2(%arg0: i32) -> (i32, i32) {
    %c0_i32 = arith.constant 0 : i32
    %c0_i32_0 = arith.constant 0 : i32
    %c0_i32_1 = arith.constant 0 : i32
    return %c0_i32, %c0_i32_0 : i32, i32
  }
  func.func @transform_3(%arg0: i32) -> (i32, i32) {
    %c0_i32 = arith.constant 0 : i32
    %c0_i32_0 = arith.constant 0 : i32
    %c0_i32_1 = arith.constant 0 : i32
    return %c0_i32, %c0_i32_0 : i32, i32
  }
  func.func @transform_4(%arg0: i32) -> (i32, i32) {
    %c0_i32 = arith.constant 0 : i32
    %c0_i32_0 = arith.constant 0 : i32
    %c0_i32_1 = arith.constant 0 : i32
    return %c0_i32, %c0_i32_0 : i32, i32
  }
  func.func @transform_5(%arg0: i32) -> (i32, i32) {
    %c0_i32 = arith.constant 0 : i32
    %c0_i32_0 = arith.constant 0 : i32
    %c0_i32_1 = arith.constant 0 : i32
    return %c0_i32, %c0_i32_0 : i32, i32
  }
  func.func @transform_6(%arg0: i32) -> (i32, i32) {
    %c0_i32 = arith.constant 0 : i32
    %c0_i32_0 = arith.constant 0 : i32
    %c0_i32_1 = arith.constant 0 : i32
    return %c0_i32, %c0_i32_0 : i32, i32
  }
  func.func @transform_7(%arg0: i32) -> (i32, i32) {
    %c0_i32 = arith.constant 0 : i32
    %c0_i32_0 = arith.constant 0 : i32
    return %arg0, %c0_i32 : i32, i32
  }
}

</mosaic_0001>

<bundles_post_ra>
// kernel: policy_forward.1
= control target key start
LH: loop header
LB: loop body
LE: loop exit
PB: predicated region body
PF: predicated region fallthrough
CT: control target
= control target key end

     0   :  { %12 = vsyncpa [#allocation3], 0  ;;  %s811_s0 = inlined_call_operand.hbm [shape: f32[8,16], index: 0, kind: input, shape index: {}]   ;;  %s812_s1 = inlined_call_operand.hbm [shape: f32[16,256], index: 1, kind: input, shape index: {}]   ;;  %s813_s2 = inlined_call_operand.vmem [shape: f32[1,256], index: 2, kind: input, shape index: {}]   ;;  %s814_s3 = inlined_call_operand.hbm [shape: f32[256,256], index: 3, kind: input, shape index: {}]   ;;  %s815_s4 = inlined_call_operand.vmem [shape: f32[1,256], index: 4, kind: input, shape index: {}]   ;;  %s816_s5 = inlined_call_operand.hbm [shape: f32[256,128], index: 5, kind: input, shape index: {}]   ;;  %s817_s6 = inlined_call_operand.vmem [shape: f32[1,128], index: 6, kind: input, shape index: {}]   ;;  %s818_s7 = inlined_call_operand.vmem [shape: f32[8,128], index: 7, kind: output, shape index: {}]  }
   0x1   :  { %13 = vsyncpa [#allocation5], 0 }
   0x2   :  { %14 = vsyncpa [#allocation8], 0  ;;  %s696_s24 = smov [#allocation4]   ;;  %s602_s28 = scalar_lea.hbm %s812_s1, 512 }
   0x3   :  { %s30_s25 = sshll.u32 %s696_s24, 4  ;;  %p603_p0 = scmp.ne.s32.totalorder %s812_s1, %s602_s28  ;;  %s31_s25 = int_to_ptr.vmem [resolvable:$true] %s30_s25 }
   0x4   :  { %p606_p1 = scmp.lt.u32.totalorder %s602_s28, %s812_s1 }
   0x6   :  { %p608_p2 = pnand %p606_p1, %p603_p0 }
   0x8   :  { %611 = shalt.err (!%p608_p2)
}
   0x9   :  { %s612_s10 = scalar_lea.vmem %s31_s25, 512  ;;  %p617_p4 = scmp.lt.s32.totalorder %s31_s25, %s31_s25 }
   0xa   :  { %p613_p3 = scmp.ne.s32.totalorder %s31_s25, %s612_s10  ;;  %p618_p5 = scmp.lt.s32.totalorder %s612_s10, %s612_s10 }
   0xc   :  { %p619_p6 = por %p618_p5, %p617_p4 }
   0xe   :  { %p620_p7 = pnand %p619_p6, %p613_p3 }
  0x10   :  { %623 = shalt.err (!%p620_p7)
}
  0x11   :  { %s697_s11 = smov 256   ;;  %s698_s12 = smov 16  }
  0x12   :  { %36 = dma.hbm_to_vmem [thread:$0]  %s812_s1, 512, %s31_s25, [#allocation5], %s697_s11, %s697_s11, %s698_s12  }
  0x13   :  { %s699_s15 = smov [#allocation2]   ;;  %s700_s17 = smov [#allocation6]  }
  0x14   :  { %s21_s16 = sshll.u32 %s699_s15, 4  ;;  %s44_s18 = sshll.u32 %s700_s17, 4  ;;  %s22_s16 = int_to_ptr.vmem [resolvable:$true] %s21_s16  ;;  %s45_s18 = int_to_ptr.vmem [resolvable:$true] %s44_s18 }
  0x15   :  { %s624_s21 = scalar_lea.hbm %s811_s0, 128 }
  0x16   :  { %p625_p8 = scmp.ne.s32.totalorder %s811_s0, %s624_s21  ;;  %p628_p9 = scmp.lt.u32.totalorder %s624_s21, %s811_s0 }
  0x18   :  { %p630_p10 = pnand %p628_p9, %p625_p8 }
  0x1a   :  { %633 = shalt.err (!%p630_p10)
}
  0x1b   :  { %s634_s1 = scalar_lea.vmem %s22_s16, 128  ;;  %p639_p12 = scmp.lt.s32.totalorder %s22_s16, %s22_s16 }
  0x1c   :  { %p635_p11 = scmp.ne.s32.totalorder %s22_s16, %s634_s1  ;;  %p640_p13 = scmp.lt.s32.totalorder %s634_s1, %s634_s1 }
  0x1e   :  { %p641_p0 = por %p640_p13, %p639_p12 }
  0x20   :  { %p642_p1 = pnand %p641_p0, %p635_p11 }
  0x22   :  { %645 = shalt.err (!%p642_p1)
}
  0x23   :  { %24 = dma.hbm_to_vmem [thread:$0]  %s811_s0, 128, %s22_s16, [#allocation3]  }
  0x24   :  { %s646_s30 = scalar_lea.hbm %s814_s3, 8192 }
  0x25   :  { %p647_p2 = scmp.ne.s32.totalorder %s814_s3, %s646_s30  ;;  %p650_p3 = scmp.lt.u32.totalorder %s646_s30, %s814_s3 }
  0x27   :  { %p652_p4 = pnand %p650_p3, %p647_p2 }
  0x29   :  { %655 = shalt.err (!%p652_p4)
}
  0x2a   :  { %s656_s14 = scalar_lea.vmem %s45_s18, 8192  ;;  %p661_p6 = scmp.lt.s32.totalorder %s45_s18, %s45_s18 }
  0x2b   :  { %p657_p5 = scmp.ne.s32.totalorder %s45_s18, %s656_s14  ;;  %p662_p7 = scmp.lt.s32.totalorder %s656_s14, %s656_s14 }
  0x2d   :  { %p663_p8 = por %p662_p7, %p661_p6 }
  0x2f   :  { %p664_p9 = pnand %p663_p8, %p657_p5 }
  0x31   :  { %667 = shalt.err (!%p664_p9)
}
  0x32   :  { %50 = dma.hbm_to_vmem [thread:$0]  %s814_s3, 8192, %s45_s18, [#allocation5], %s697_s11, %s697_s11, %s698_s12  }
  0x33   :  { %s701_s16 = smov [#allocation7]   ;;  %s668_s21 = scalar_lea.hbm %s816_s5, 4096 }
  0x34   :  { %s58_s17 = sshll.u32 %s701_s16, 4  ;;  %p669_p10 = scmp.ne.s32.totalorder %s816_s5, %s668_s21  ;;  %s59_s17 = int_to_ptr.vmem [resolvable:$true] %s58_s17 }
  0x35   :  { %p672_p11 = scmp.lt.u32.totalorder %s668_s21, %s816_s5 }
  0x37   :  { %p674_p12 = pnand %p672_p11, %p669_p10 }
  0x39   :  { %677 = shalt.err (!%p674_p12)
}
  0x3a   :  { %s678_s1 = scalar_lea.vmem %s59_s17, 4096  ;;  %p683_p0 = scmp.lt.s32.totalorder %s59_s17, %s59_s17 }
  0x3b   :  { %p679_p13 = scmp.ne.s32.totalorder %s59_s17, %s678_s1  ;;  %p684_p1 = scmp.lt.s32.totalorder %s678_s1, %s678_s1 }
  0x3d   :  { %p685_p2 = por %p684_p1, %p683_p0 }
  0x3f   :  { %p686_p3 = pnand %p685_p2, %p679_p13 }
  0x41   :  { %689 = shalt.err (!%p686_p3)
}
  0x42   :  { %s702_s3 = smov 128   ;;  %s703_s11 = smov 8  }
  0x43   :  { %64 = dma.hbm_to_vmem [thread:$0]  %s816_s5, 4096, %s59_s17, [#allocation8], %s702_s3, %s702_s3, %s703_s11  }
  0x44   :  { %690 = dma.done.wait [#allocation3], 128  }
  0x45   :  { %691 = vsyncadd [#allocation3], 4294967168 }
  0x46   :  { %692 = dma.done.wait [#allocation5], 8704  }
  0x47   :  { %693 = vsyncadd [#allocation5], 4294958592 }
  0x48   :  { %694 = dma.done.wait [#allocation8], 4096  }
  0x49   :  { %695 = vsyncadd [#allocation8], 4294963200  ;;  %v704_v0 = vmov 0.0   ;;  %v81_v1 = vld [vmem:[#allocation4 + $0x8] sm:$0xff]  ;;  %v83_v2 = vld [vmem:[#allocation4 + $0x18] sm:$0xff]  ;;  %vm96_vm0 = vcmask 130048  }
  0x4a   :  { %164 = vmatprep.mubr.f32.mxu0 %v704_v0  ;;  %v80_v3 = vld [vmem:[#allocation4] sm:$0xff]  ;;  %v489_v4 = vpack.c.bf16 %v83_v2, %v81_v1  ;;  %v82_v5 = vld [vmem:[#allocation4 + $0x10] sm:$0xff]  ;;  %v174_v6 = vld [vmem:[#allocation6 + $0x8] sm:$0xff] }
  0x4b   :  { %v491_v7 = vpack.c.bf16 %v82_v5, %v80_v3  ;;  %v79_v8 = vld [vmem:[#allocation2] sm:$0xff]  ;;  %v173_v10 = vld [vmem:[#allocation6] sm:$0xff]  ;;  %v175_v11 = vld [vmem:[#allocation6 + $0x10] sm:$0xff] }
  0x4c   :  { %v176_v9 = vld [vmem:[#allocation6 + $0x18] sm:$0xff]  ;;  %490 = vmatprep.subr.bf16.mxu0 %v489_v4  ;;  %v495_v13 = vpack.c.bf16 %v175_v11, %v173_v10  ;;  %v178_v14 = vld [vmem:[#allocation6 + $0x28] sm:$0xff]  ;;  %v177_v16 = vld [vmem:[#allocation6 + $0x20] sm:$0xff] }
  0x4d   :  { %v493_v12 = vpack.c.bf16 %v176_v9, %v174_v6  ;;  %v180_v15 = vld [vmem:[#allocation6 + $0x38] sm:$0xff]  ;;  %492 = vmatpush1.bf16.msra.mxu0 %v491_v7  ;;  %v179_v18 = vld [vmem:[#allocation6 + $0x30] sm:$0xff]  ;;  %v182_v19 = vld [vmem:[#allocation6 + $0x48] sm:$0xff] }
  0x4e   :  { %v497_v17 = vpack.c.bf16 %v180_v15, %v178_v14  ;;  %v184_v20 = vld [vmem:[#allocation6 + $0x58] sm:$0xff]  ;;  %v499_v21 = vpack.c.bf16 %v179_v18, %v177_v16  ;;  %v181_v23 = vld [vmem:[#allocation6 + $0x40] sm:$0xff]  ;;  %v183_v24 = vld [vmem:[#allocation6 + $0x50] sm:$0xff] }
  0x4f   :  { %494 = vmatprep.subr.bf16.mxu1 %v493_v12  ;;  %v501_v22 = vpack.c.bf16 %v184_v20, %v182_v19  ;;  %v186_v25 = vld [vmem:[#allocation6 + $0x68] sm:$0xff]  ;;  %v188_v26 = vld [vmem:[#allocation6 + $0x78] sm:$0xff]  ;;  %v503_v27 = vpack.c.bf16 %v183_v24, %v181_v23  ;;  %v185_v29 = vld [vmem:[#allocation6 + $0x60] sm:$0xff] }
  0x50   :  { %496 = vmatpush1.bf16.msra.mxu1 %v495_v13  ;;  %452 = vmatmul.mubr.msk.f32.vlgmr.msra.gmra.mrb[0].mxu0 %vm96_vm0, %v79_v8  ;;  %v505_v28 = vpack.c.bf16 %v188_v26, %v186_v25  ;;  %v187_v30 = vld [vmem:[#allocation6 + $0x70] sm:$0xff]  ;;  %v190_v31 = vld [vmem:[#allocation6 + $0x88] sm:$0xff]  ;;  %v192_v32 = vld [vmem:[#allocation6 + $0x98] sm:$0xff] }
  0x51   :  { %498 = vmatprep.subr.bf16.mxu1 %v497_v17  ;;  %v507_v33 = vpack.c.bf16 %v187_v30, %v185_v29  ;;  %v509_v34 = vpack.c.bf16 %v192_v32, %v190_v31  ;;  %v189_v35 = vld [vmem:[#allocation6 + $0x80] sm:$0xff]  ;;  %v191_v36 = vld [vmem:[#allocation6 + $0x90] sm:$0xff]  ;;  %v194_v37 = vld [vmem:[#allocation6 + $0xa8] sm:$0xff] }
  0x52   :  { %v196_v38 = vld [vmem:[#allocation6 + $0xb8] sm:$0xff]  ;;  %v511_v39 = vpack.c.bf16 %v191_v36, %v189_v35  ;;  %v193_v41 = vld [vmem:[#allocation6 + $0xa0] sm:$0xff]  ;;  %v195_v42 = vld [vmem:[#allocation6 + $0xb0] sm:$0xff] }
  0x53   :  { %v513_v40 = vpack.c.bf16 %v196_v38, %v194_v37  ;;  %v198_v43 = vld [vmem:[#allocation6 + $0xc8] sm:$0xff]  ;;  %v200_v44 = vld [vmem:[#allocation6 + $0xd8] sm:$0xff]  ;;  %v515_v45 = vpack.c.bf16 %v195_v42, %v193_v41  ;;  %v197_v47 = vld [vmem:[#allocation6 + $0xc0] sm:$0xff] }
  0x54   :  { %500 = vmatpush1.bf16.msra.mxu1 %v499_v21  ;;  %v517_v46 = vpack.c.bf16 %v200_v44, %v198_v43  ;;  %v199_v48 = vld [vmem:[#allocation6 + $0xd0] sm:$0xff]  ;;  %v202_v49 = vld [vmem:[#allocation6 + $0xe8] sm:$0xff]  ;;  %v204_v50 = vld [vmem:[#allocation6 + $0xf8] sm:$0xff] }
  0x55   :  { %502 = vmatprep.subr.bf16.mxu1 %v501_v22  ;;  %v519_v51 = vpack.c.bf16 %v199_v48, %v197_v47  ;;  %v521_v52 = vpack.c.bf16 %v204_v50, %v202_v49  ;;  %v201_v53 = vld [vmem:[#allocation6 + $0xe0] sm:$0xff]  ;;  %v203_v54 = vld [vmem:[#allocation6 + $0xf0] sm:$0xff]  ;;  %v206_v55 = vld [vmem:[#allocation6 + $0x108] sm:$0xff] }
  0x56   :  { %v208_v56 = vld [vmem:[#allocation6 + $0x118] sm:$0xff]  ;;  %v523_v57 = vpack.c.bf16 %v203_v54, %v201_v53  ;;  %v205_v59 = vld [vmem:[#allocation6 + $0x100] sm:$0xff]  ;;  %v207_v60 = vld [vmem:[#allocation6 + $0x110] sm:$0xff] }
  0x57   :  { %v525_v58 = vpack.c.bf16 %v208_v56, %v206_v55  ;;  %v210_v61 = vld [vmem:[#allocation6 + $0x128] sm:$0xff]  ;;  %v212_v62 = vld [vmem:[#allocation6 + $0x138] sm:$0xff]  ;;  %v527_v63 = vpack.c.bf16 %v207_v60, %v205_v59  ;;  %v209_v1 = vld [vmem:[#allocation6 + $0x120] sm:$0xff] }
  0x58   :  { %504 = vmatpush1.bf16.msra.mxu1 %v503_v27  ;;  %v529_v0 = vpack.c.bf16 %v212_v62, %v210_v61  ;;  %v211_v2 = vld [vmem:[#allocation6 + $0x130] sm:$0xff]  ;;  %v214_v3 = vld [vmem:[#allocation6 + $0x148] sm:$0xff]  ;;  %v216_v4 = vld [vmem:[#allocation6 + $0x158] sm:$0xff] }
  0x59   :  { %506 = vmatprep.subr.bf16.mxu1 %v505_v28  ;;  %v531_v5 = vpack.c.bf16 %v211_v2, %v209_v1  ;;  %v533_v6 = vpack.c.bf16 %v216_v4, %v214_v3  ;;  %v213_v7 = vld [vmem:[#allocation6 + $0x140] sm:$0xff]  ;;  %v215_v8 = vld [vmem:[#allocation6 + $0x150] sm:$0xff]  ;;  %v218_v9 = vld [vmem:[#allocation6 + $0x168] sm:$0xff] }
  0x5a   :  { %v220_v10 = vld [vmem:[#allocation6 + $0x178] sm:$0xff]  ;;  %v535_v11 = vpack.c.bf16 %v215_v8, %v213_v7  ;;  %v217_v13 = vld [vmem:[#allocation6 + $0x160] sm:$0xff]  ;;  %v219_v14 = vld [vmem:[#allocation6 + $0x170] sm:$0xff] }
  0x5b   :  { %v537_v12 = vpack.c.bf16 %v220_v10, %v218_v9  ;;  %v222_v15 = vld [vmem:[#allocation6 + $0x188] sm:$0xff]  ;;  %v224_v16 = vld [vmem:[#allocation6 + $0x198] sm:$0xff]  ;;  %v539_v17 = vpack.c.bf16 %v219_v14, %v217_v13  ;;  %v221_v19 = vld [vmem:[#allocation6 + $0x180] sm:$0xff] }
  0x5c   :  { %508 = vmatpush1.bf16.msra.mxu1 %v507_v33  ;;  %v541_v18 = vpack.c.bf16 %v224_v16, %v222_v15  ;;  %v223_v20 = vld [vmem:[#allocation6 + $0x190] sm:$0xff]  ;;  %v226_v21 = vld [vmem:[#allocation6 + $0x1a8] sm:$0xff]  ;;  %v228_v22 = vld [vmem:[#allocation6 + $0x1b8] sm:$0xff]  ;;  %v86_v15 = vlaneseq }
  0x5d   :  { %510 = vmatprep.subr.bf16.mxu1 %v509_v34  ;;  %v543_v23 = vpack.c.bf16 %v223_v20, %v221_v19  ;;  %v545_v24 = vpack.c.bf16 %v228_v22, %v226_v21  ;;  %v225_v25 = vld [vmem:[#allocation6 + $0x1a0] sm:$0xff]  ;;  %v227_v26 = vld [vmem:[#allocation6 + $0x1b0] sm:$0xff]  ;;  %v230_v27 = vld [vmem:[#allocation6 + $0x1c8] sm:$0xff] }
  0x5e   :  { %v232_v28 = vld [vmem:[#allocation6 + $0x1d8] sm:$0xff]  ;;  %v547_v29 = vpack.c.bf16 %v227_v26, %v225_v25  ;;  %v229_v31 = vld [vmem:[#allocation6 + $0x1c0] sm:$0xff]  ;;  %v231_v32 = vld [vmem:[#allocation6 + $0x1d0] sm:$0xff]  ;;  %v87_v16 = vshrl.u32 %v86_v15, 7 }
  0x5f   :  { %v549_v30 = vpack.c.bf16 %v232_v28, %v230_v27  ;;  %v551_v33 = vpack.c.bf16 %v231_v32, %v229_v31  ;;  %v234_v34 = vld [vmem:[#allocation6 + $0x1e8] sm:$0xff]  ;;  %v236_v35 = vld [vmem:[#allocation6 + $0x1f8] sm:$0xff]  ;;  %v233_v37 = vld [vmem:[#allocation6 + $0x1e0] sm:$0xff] }
  0x60   :  { %512 = vmatpush1.bf16.msra.mxu1 %v511_v39  ;;  %v553_v36 = vpack.c.bf16 %v236_v35, %v234_v34  ;;  %v235_v38 = vld [vmem:[#allocation6 + $0x1f0] sm:$0xff]  ;;  %v339_v41 = vld [vmem:[#allocation7 + $0x88] sm:$0xff]  ;;  %v322_v42 = vld [vmem:[#allocation7] sm:$0xff]  ;;  %v92_v19 = vsub.s32 1, %v87_v16 }
  0x61   :  { %514 = vmatprep.subr.bf16.mxu1 %v513_v40  ;;  %v555_v39 = vpack.c.bf16 %v235_v38, %v233_v37  ;;  %v338_v40 = vld [vmem:[#allocation7 + $0x80] sm:$0xff]  ;;  %v323_v44 = vld [vmem:[#allocation7 + $0x8] sm:$0xff]  ;;  %v324_v49 = vld [vmem:[#allocation7 + $0x10] sm:$0xff] }
  0x62   :  { %v557_v43 = vpack.c.bf16 %v339_v41, %v338_v40  ;;  %v559_v47 = vpack.c.bf16 %v323_v44, %v322_v42  ;;  %v325_v50 = vld [vmem:[#allocation7 + $0x18] sm:$0xff]  ;;  %v326_v55 = vld [vmem:[#allocation7 + $0x20] sm:$0xff]  ;;  %v327_v56 = vld [vmem:[#allocation7 + $0x28] sm:$0xff] }
  0x63   :  { %v563_v53 = vpack.c.bf16 %v325_v50, %v324_v49  ;;  %v567_v59 = vpack.c.bf16 %v327_v56, %v326_v55  ;;  %v328_v61 = vld [vmem:[#allocation7 + $0x30] sm:$0xff]  ;;  %v329_v62 = vld [vmem:[#allocation7 + $0x38] sm:$0xff]  ;;  %v330_v3 = vld [vmem:[#allocation7 + $0x40] sm:$0xff] }
  0x64   :  { %516 = vmatpush1.bf16.msra.mxu1 %v515_v45  ;;  %v340_v45 = vld [vmem:[#allocation7 + $0x90] sm:$0xff]  ;;  %558 = vmatprep.subr.bf16.mxu0 %v557_v43  ;;  %v571_v1 = vpack.c.bf16 %v329_v62, %v328_v61  ;;  %v331_v4 = vld [vmem:[#allocation7 + $0x48] sm:$0xff]  ;;  %v333_v10 = vld [vmem:[#allocation7 + $0x58] sm:$0xff] }
  0x65   :  { %518 = vmatprep.subr.bf16.mxu1 %v517_v46  ;;  %v341_v46 = vld [vmem:[#allocation7 + $0x98] sm:$0xff]  ;;  %560 = vmatpush3.bf16.msra.mxu0 %v559_v47  ;;  %v575_v7 = vpack.c.bf16 %v331_v4, %v330_v3  ;;  %v332_v9 = vld [vmem:[#allocation7 + $0x50] sm:$0xff]  ;;  %v334_v28 = vld [vmem:[#allocation7 + $0x60] sm:$0xff] }
  0x66   :  { %v561_v48 = vpack.c.bf16 %v341_v46, %v340_v45  ;;  %v579_v13 = vpack.c.bf16 %v333_v10, %v332_v9  ;;  %v352_v31 = vld [vmem:[#allocation7 + $0xf0] sm:$0xff]  ;;  %v353_v32 = vld [vmem:[#allocation7 + $0xf8] sm:$0xff]  ;;  %v432_v46 = vand.u32 127, %v86_v15 }
  0x67   :  { %v336_v34 = vld [vmem:[#allocation7 + $0x70] sm:$0xff]  ;;  %v337_v35 = vld [vmem:[#allocation7 + $0x78] sm:$0xff] }
  0x68   :  { %520 = vmatpush1.bf16.msra.mxu1 %v519_v51  ;;  %v342_v51 = vld [vmem:[#allocation7 + $0xa0] sm:$0xff]  ;;  %562 = vmatprep.subr.bf16.mxu0 %v561_v48  ;;  %v237_v37 = vld [vmem:[%s815_s4] sm:$0x3]  ;;  %vm433_vm1 = vcmp.lt.s32.totalorder %v432_v46, 4 }
  0x69   :  { %522 = vmatprep.subr.bf16.mxu1 %v521_v52  ;;  %v343_v52 = vld [vmem:[#allocation7 + $0xa8] sm:$0xff]  ;;  %564 = vmatpush3.bf16.msra.mxu0 %v563_v53  ;;  %v453_v49 = vld [vmem:[%s817_s6] ss:$0 sm:$0xff] }
  0x6a   :  { %v565_v54 = vpack.c.bf16 %v343_v52, %v342_v51 }
  0x6c   :  { %524 = vmatpush1.bf16.msra.mxu1 %v523_v57  ;;  %v344_v57 = vld [vmem:[#allocation7 + $0xb0] sm:$0xff]  ;;  %566 = vmatprep.subr.bf16.mxu0 %v565_v54 }
  0x6d   :  { %526 = vmatprep.subr.bf16.mxu1 %v525_v58  ;;  %v345_v58 = vld [vmem:[#allocation7 + $0xb8] sm:$0xff]  ;;  %568 = vmatpush3.bf16.msra.mxu0 %v567_v59 }
  0x6e   :  { %v569_v60 = vpack.c.bf16 %v345_v58, %v344_v57 }
  0x70   :  { %528 = vmatpush1.bf16.msra.mxu1 %v527_v63  ;;  %v346_v63 = vld [vmem:[#allocation7 + $0xc0] sm:$0xff]  ;;  %570 = vmatprep.subr.bf16.mxu0 %v569_v60 }
  0x71   :  { %530 = vmatprep.subr.bf16.mxu1 %v529_v0  ;;  %v347_v0 = vld [vmem:[#allocation7 + $0xc8] sm:$0xff]  ;;  %572 = vmatpush3.bf16.msra.mxu0 %v571_v1 }
  0x72   :  { %v573_v2 = vpack.c.bf16 %v347_v0, %v346_v63 }
  0x74   :  { %532 = vmatpush1.bf16.msra.mxu1 %v531_v5  ;;  %v348_v5 = vld [vmem:[#allocation7 + $0xd0] sm:$0xff]  ;;  %574 = vmatprep.subr.bf16.mxu0 %v573_v2 }
  0x75   :  { %534 = vmatprep.subr.bf16.mxu1 %v533_v6  ;;  %v349_v6 = vld [vmem:[#allocation7 + $0xd8] sm:$0xff]  ;;  %576 = vmatpush3.bf16.msra.mxu0 %v575_v7 }
  0x76   :  { %v577_v8 = vpack.c.bf16 %v349_v6, %v348_v5 }
  0x78   :  { %536 = vmatpush1.bf16.msra.mxu1 %v535_v11  ;;  %v350_v11 = vld [vmem:[#allocation7 + $0xe0] sm:$0xff]  ;;  %578 = vmatprep.subr.bf16.mxu0 %v577_v8 }
  0x79   :  { %538 = vmatprep.subr.bf16.mxu1 %v537_v12  ;;  %v351_v12 = vld [vmem:[#allocation7 + $0xe8] sm:$0xff]  ;;  %580 = vmatpush3.bf16.msra.mxu0 %v579_v13 }
  0x7a   :  { %v581_v14 = vpack.c.bf16 %v351_v12, %v350_v11 }
  0x7c   :  { %540 = vmatpush1.bf16.msra.mxu1 %v539_v17  ;;  %582 = vmatprep.subr.bf16.mxu0 %v581_v14  ;;  %v88_v17 = vsub.s32 0, %v87_v16 }
  0x7d   :  { %542 = vmatprep.subr.bf16.mxu1 %v541_v18  ;;  %v84_v18 = vld [vmem:[%s813_s2] sm:$0x3] }
  0x7e   :  { %v89_v20 = vrot.slane %v84_v18, %v88_v17  ;;  %v93_v21 = vrot.slane %v84_v18, %v92_v19  ;;  %v242_v38 = vrot.slane %v237_v37, %v88_v17 }
  0x80   :  { %544 = vmatpush1.bf16.msra.mxu1 %v543_v23 }
  0x81   :  { %546 = vmatprep.subr.bf16.mxu1 %v545_v24 }
  0x84   :  { %548 = vmatpush1.bf16.msra.mxu1 %v547_v29  ;;  %v335_v29 = vld [vmem:[#allocation7 + $0x68] sm:$0xff] }
  0x85   :  { %550 = vmatprep.subr.bf16.mxu1 %v549_v30  ;;  %v583_v30 = vpack.c.bf16 %v335_v29, %v334_v28 }
  0x87   :  { %584 = vmatpush3.bf16.msra.mxu0 %v583_v30 }
  0x88   :  { %552 = vmatpush1.bf16.msra.mxu1 %v551_v33  ;;  %v585_v33 = vpack.c.bf16 %v353_v32, %v352_v31 }
  0x89   :  { %554 = vmatprep.subr.bf16.mxu1 %v553_v36  ;;  %v587_v36 = vpack.c.bf16 %v337_v35, %v336_v34 }
  0x8a   :  { %586 = vmatprep.subr.bf16.mxu0 %v585_v33 }
  0x8b   :  { %588 = vmatpush3.bf16.msra.mxu0 %v587_v36 }
  0x8c   :  { %556 = vmatpush1.bf16.msra.mxu1 %v555_v39  ;;  %v246_v39 = vrot.slane %v237_v37, %v92_v19 }
 0x123   :  { %v166_v22 = vpop.f32.mrb[0].mxu0 }
 0x124   :  { %v167_v23 = vadd.f32 %v166_v22, %v89_v20  ;;  %v168_v24 = vpop.f32.mrb[1].mxu0 }
 0x125   :  { %v169_v25 = vadd.f32 %v168_v24, %v93_v21 }
 0x126   :  { %v171_v27 = vmax.f32 %v167_v23, 0.0 }
 0x127   :  { %v172_v26 = vmax.f32 %v169_v25, 0.0 }
 0x129   :  { %313 = vmatprep.mubr.f32.mxu1 %v172_v26 }
 0x12a   :  { %314 = vmatmul.mubr.f32.vlgmr.msra.gmra.mrb[0].mxu1 %v171_v27 }
 0x1fd   :  { %v315_v40 = vpop.f32.mrb[0].mxu1 }
 0x1fe   :  { %v316_v41 = vadd.f32 %v315_v40, %v242_v38  ;;  %v317_v42 = vpop.f32.mrb[1].mxu1 }
 0x1ff   :  { %v318_v43 = vadd.f32 %v317_v42, %v246_v39 }
 0x200   :  { %v320_v45 = vmax.f32 %v316_v41, 0.0 }
 0x201   :  { %v321_v44 = vmax.f32 %v318_v43, 0.0 }
 0x203   :  { %425 = vmatprep.mubr.f32.mxu0 %v321_v44 }
 0x204   :  { %426 = vmatmul.mubr.f32.vlgmr.msra.gmra.mrb[2].mxu0 %v320_v45 }
 0x2d7   :  { %v486_v47 = vpop.f32.mrb[2].mxu0 }
 0x2d8   :  { %v487_v48 = vpop.f32.mrb[3].mxu0 }
 0x2d9   :  { %v488_v50 = vadd.f32 %v487_v48, %v486_v47 }
 0x2db   :  { %v428_v51 = vadd.f32 %v488_v50, %v453_v49 }
 0x2dd   :  { %v434_v52 = vsel %vm433_vm1, %v428_v51, -1e+30 }
 0x2de   :  { %435 = vmax.xlane.f32.xlu0 %v434_v52 }
 0x36b   :  { %v436_v53 = vpop.xlane.xlu0 %435 }
 0x36c   :  { %v437_v54 = vsub.f32 %v434_v52, %v436_v53 }
 0x36e   :  { %v438_v55 = vmul.f32 1.442695, %v437_v54 }
 0x370   :  { %598 = vpow2.f32 %v438_v55 }
 0x37a   :  { %v599_v56 = vpop.eup %598 }
 0x37b   :  { %440 = vadd.xlane.f32.xlu0 %v599_v56 }
 0x408   :  { %v441_v57 = vpop.xlane.xlu0 %440 }
 0x409   :  { %600 = vrcp.f32 %v441_v57 }
 0x413   :  { %v601_v58 = vpop.eup %600 }
 0x414   :  { %v443_v59 = vmul.f32 %v601_v58, %v599_v56 }
 0x416   :  { %444 = vst [vmem:[%s818_s7] sm:$0xff] %v443_v59 }
 0x417   :  { %449 = vsyncpa [#allocation3], 1 }
 0x418   :  { %450 = vsyncpa [#allocation5], 1 }
 0x419   :  { %451 = vsyncpa [#allocation8], 1 }

</bundles_post_ra>
